<compile_context>
chip_gen: v6e
topology: v6e:2x2x1
jax: 0.10.0
libtpu: 0.0.40
codegen_flags: <defaults>
</compile_context>

<pallas_src>
import math

import jax
import jax.numpy as jnp
from jax import lax
from jax.experimental import pallas as pl
from jax.experimental.pallas import tpu as pltpu

# Laplace wavelet constants (from the PyTorch `Laplace` helper).
_A = 0.08
_EP = 0.03
_TAL = 0.1
_F = 50.0
_W = 2.0 * math.pi * _F
_COEF = -_EP / math.sqrt(1.0 - _EP * _EP)  # -ep / sqrt(1 - ep^2)


def _laplace_conv_kernel(filt_ref, x_ref, o_ref):
    """filt_ref: SMEM (C, K); x_ref: (n_tile, l_x_total); o_ref: (n_tile, C, l_tile)."""
    n_tile, c_out, l_tile = o_ref.shape
    k_size = filt_ref.shape[1]

    j = pl.program_id(1)
    base = pl.multiple_of(j * l_tile, l_tile)           # aligned tile start

    # Output tile plus one 128-lane halo chunk (K - 1 <= 128).
    window = x_ref[:, pl.ds(base, l_tile + 128)]        # (n_tile, l_tile + 128)

    # Fully unrolled VPU MAC, f32 accumulation, batch rows on the sublane dim.
    # k outer so each lane-shifted slice is materialized exactly once.
    accs = [None] * c_out
    for k in range(k_size):
        w_k = window[:, k:k + l_tile]                   # (n_tile, l_tile)
        for c in range(c_out):
            term = filt_ref[c, k] * w_k                 # SMEM scalar * vector
            accs[c] = term if accs[c] is None else accs[c] + term

    # Single whole-block store, lane-dense (l_tile multiple of 128).
    o_ref[...] = jnp.stack(accs, axis=1).astype(o_ref.dtype)


def laplace_fast_forward(waveforms, a_param, b_param, kernel_size,
                         *, l_tile=512, n_tile=None):
    """Pallas implementation of Laplace_fast.forward.

    waveforms: (N, 1, L) float32 (NCW).
    a_param, b_param: (out_channels,) float32 (the nn.Parameters).
    kernel_size: the constructor's kernel_size argument.
    """
    # Replicate the __init__ kernel-size adjustment.
    ksz = kernel_size - 1
    if kernel_size % 2 == 0:
        ksz += 1

    n, c_in, length = waveforms.shape
    assert c_in == 1, "Laplace_fast only supports one input channel"
    out_channels = a_param.shape[0]
    padding = 2
    l_out = length + 2 * padding - ksz + 1

    assert l_tile % 128 == 0, "L tile must be lane-dense (multiple of 128)"
    assert ksz - 1 <= 128, "kernel halo must fit inside one 128-lane chunk"

    if n_tile is None:
        n_tile = n if n <= 8 else 8
    assert n % n_tile == 0, "batch must be divisible by the batch tile"

    # Clamp the L tile for short signals; keep everything lane-dense.
    l_out_128 = pl.cdiv(l_out, 128) * 128
    l_tile_eff = min(l_tile, l_out_128)
    l_out_pad = pl.cdiv(l_out, l_tile_eff) * l_tile_eff
    l_x_total = l_out_pad + 128

    # Tiny (C, K) filter bank, computed once in plain JAX; lives in SMEM:
    #   p1 = time_disc - b/a ;  filt = A * exp(coef*w*(p1-tal)) * -sin(w*(p1-tal))
    time_disc = jnp.linspace(0.0, 1.0, ksz, dtype=jnp.float32)             # (K,)
    p1 = time_disc[None, :] - (b_param / a_param)[:, None]                 # (C, K)
    arg = _W * (p1 - _TAL)
    filt = (_A * jnp.exp(_COEF * arg) * (-jnp.sin(arg))).astype(jnp.float32)

    # Squeeze singleton channel; left conv-pad (2) + right zero-pad to l_x_total.
    x = waveforms[:, 0, :].astype(jnp.float32)
    x_pad = jnp.pad(x, ((0, 0), (padding, l_x_total - length - padding)))  # (N, L_x_total)

    grid = (n // n_tile, l_out_pad // l_tile_eff)

    # Explicit VMEM budget: double-buffered input row + (sublane-padded) output block.
    x_block_bytes = n_tile * l_x_total * 4
    c_pad = ((out_channels + 7) // 8) * 8
    out_block_bytes = n_tile * c_pad * l_tile_eff * 4
    vmem_need = 2 * (x_block_bytes + out_block_bytes) + (2 << 20)
    vmem_limit = int(min(max(vmem_need, 32 * 1024 * 1024), 96 * 1024 * 1024))

    out_padded = pl.pallas_call(
        _laplace_conv_kernel,
        out_shape=jax.ShapeDtypeStruct((n, out_channels, l_out_pad), jnp.float32),
        grid=grid,
        in_specs=[
            # Filter bank: whole (C, K) table in SMEM, read as scalar taps.
            pl.BlockSpec(memory_space=pltpu.MemorySpace.SMEM),
            # Full padded row per batch tile; block index constant over j (the
            # inner grid axis), so it is DMA'd once per batch tile.
            pl.BlockSpec((n_tile, l_x_total), lambda i, j: (i, 0)),
        ],
        out_specs=pl.BlockSpec((n_tile, out_channels, l_tile_eff),
                               lambda i, j: (i, 0, j)),
        compiler_params=pltpu.CompilerParams(
            dimension_semantics=("parallel", "arbitrary"),
            vmem_limit_bytes=vmem_limit),
        cost_estimate=pl.CostEstimate(
            flops=2 * n * out_channels * l_out_pad * ksz,
            transcendentals=0,
            bytes_accessed=4 * (n * l_x_total
                                + out_channels * ksz
                                + n * out_channels * l_out_pad)),
    )(filt, x_pad)

    # Slice the lane-padding back off.
    return out_padded[:, :, :l_out].astype(waveforms.dtype)


def _reference_forward(waveforms, a_param, b_param, kernel_size):
    """Pure-JAX reference mirroring the PyTorch module, for a sanity check."""
    ksz = kernel_size - 1
    if kernel_size % 2 == 0:
        ksz += 1
    time_disc = jnp.linspace(0.0, 1.0, ksz, dtype=jnp.float32)
    p1 = time_disc[None, :] - (b_param / a_param)[:, None]
    arg = _W * (p1 - _TAL)
    filt = _A * jnp.exp(_COEF * arg) * (-jnp.sin(arg))       # (C, K)
    filt = filt[:, None, :]                                   # (C, 1, K) = OIH
    return lax.conv_general_dilated(
        waveforms, filt, window_strides=(1,), padding=[(2, 2)],
        dimension_numbers=("NCH", "OIH", "NCH"))


def _check(out, ref):
    assert out.shape == ref.shape, (out.shape, ref.shape)
    denom = jnp.maximum(jnp.max(jnp.abs(ref)), 1.0)
    rel_err = float(jnp.max(jnp.abs(out - ref)) / denom)
    assert rel_err < 1e-4, rel_err


if __name__ == "__main__":
    key = jax.random.PRNGKey(0)
    k1, k2 = jax.random.split(key)

    out_channels = 4
    kernel_size = 8                     # even -> effective K = 8
    a_param = jnp.linspace(1.0, 10.0, out_channels, dtype=jnp.float32)
    b_param = jnp.linspace(0.0, 10.0, out_channels, dtype=jnp.float32)

    # Config 1: small, single tile (defaults: n_tile = batch, clamped L tile).
    batch, length = 4, 200
    waveforms = jax.random.normal(k1, (batch, 1, length), dtype=jnp.float32)
    out = laplace_fast_forward(waveforms, a_param, b_param, kernel_size)
    out = jax.block_until_ready(out)
    _check(out, _reference_forward(waveforms, a_param, b_param, kernel_size))

    # Config 2: multiple batch tiles and multiple L tiles (exercises the halo
    # across tile boundaries and input-row reuse over the inner grid axis).
    batch2, length2 = 4, 400
    waveforms2 = jax.random.normal(k2, (batch2, 1, length2), dtype=jnp.float32)
    out2 = laplace_fast_forward(waveforms2, a_param, b_param, kernel_size,
                                l_tile=128, n_tile=2)
    out2 = jax.block_until_ready(out2)
    _check(out2, _reference_forward(waveforms2, a_param, b_param, kernel_size))

    print("KERNEL_OK")
</pallas_src>

<mosaic_0001>
module attributes {stable_mosaic.version = 11 : i64} {
  func.func @_laplace_conv_kernel(%arg0: i32, %arg1: i32, %arg2: memref<4x8xf32, #tpu.memory_space<smem>>, %arg3: memref<4x384xf32, #tpu.memory_space<vmem>>, %arg4: memref<4x4x256xf32, #tpu.memory_space<vmem>>) attributes {dimension_semantics = [#tpu.dimension_semantics<parallel>, #tpu.dimension_semantics<arbitrary>], iteration_bounds = array<i64: 1, 1>, scalar_prefetch = 0 : i64, scratch_operands = 0 : i64, tpu.core_type = #tpu.core_type<tc>, window_params = [{transform_indices = @transform_0, window_bounds = array<i64: 4, 8>}, {transform_indices = @transform_1, window_bounds = array<i64: 4, 384>}, {transform_indices = @transform_2, window_bounds = array<i64: 4, 4, 256>}]} {
    %c256_i32 = arith.constant 256 : i32
    %0 = arith.muli %arg1, %c256_i32 : i32
    %1 = tpu.assume_multiple %0, 256 : i32
    %c0 = arith.constant 0 : index
    %2 = arith.index_cast %1 : i32 to index
    %3 = vector.load %arg3[%c0, %2] : memref<4x384xf32, #tpu.memory_space<vmem>>, vector<4x384xf32>
    %4 = vector.extract_strided_slice %3 {offsets = [0, 0], sizes = [4, 256], strides = [1, 1]} : vector<4x384xf32> to vector<4x256xf32>
    %c0_0 = arith.constant 0 : index
    %c0_1 = arith.constant 0 : index
    %5 = memref.load %arg2[%c0_0, %c0_1] : memref<4x8xf32, #tpu.memory_space<smem>>
    %6 = vector.broadcast %5 : f32 to vector<4x256xf32>
    %7 = arith.mulf %6, %4 : vector<4x256xf32>
    %c1 = arith.constant 1 : index
    %c0_2 = arith.constant 0 : index
    %8 = memref.load %arg2[%c1, %c0_2] : memref<4x8xf32, #tpu.memory_space<smem>>
    %9 = vector.broadcast %8 : f32 to vector<4x256xf32>
    %10 = arith.mulf %9, %4 : vector<4x256xf32>
    %c2 = arith.constant 2 : index
    %c0_3 = arith.constant 0 : index
    %11 = memref.load %arg2[%c2, %c0_3] : memref<4x8xf32, #tpu.memory_space<smem>>
    %12 = vector.broadcast %11 : f32 to vector<4x256xf32>
    %13 = arith.mulf %12, %4 : vector<4x256xf32>
    %c3 = arith.constant 3 : index
    %c0_4 = arith.constant 0 : index
    %14 = memref.load %arg2[%c3, %c0_4] : memref<4x8xf32, #tpu.memory_space<smem>>
    %15 = vector.broadcast %14 : f32 to vector<4x256xf32>
    %16 = arith.mulf %15, %4 : vector<4x256xf32>
    %17 = vector.extract_strided_slice %3 {offsets = [0, 1], sizes = [4, 256], strides = [1, 1]} : vector<4x384xf32> to vector<4x256xf32>
    %c0_5 = arith.constant 0 : index
    %c1_6 = arith.constant 1 : index
    %18 = memref.load %arg2[%c0_5, %c1_6] : memref<4x8xf32, #tpu.memory_space<smem>>
    %19 = vector.broadcast %18 : f32 to vector<4x256xf32>
    %20 = arith.mulf %19, %17 : vector<4x256xf32>
    %21 = arith.addf %7, %20 : vector<4x256xf32>
    %c1_7 = arith.constant 1 : index
    %c1_8 = arith.constant 1 : index
    %22 = memref.load %arg2[%c1_7, %c1_8] : memref<4x8xf32, #tpu.memory_space<smem>>
    %23 = vector.broadcast %22 : f32 to vector<4x256xf32>
    %24 = arith.mulf %23, %17 : vector<4x256xf32>
    %25 = arith.addf %10, %24 : vector<4x256xf32>
    %c2_9 = arith.constant 2 : index
    %c1_10 = arith.constant 1 : index
    %26 = memref.load %arg2[%c2_9, %c1_10] : memref<4x8xf32, #tpu.memory_space<smem>>
    %27 = vector.broadcast %26 : f32 to vector<4x256xf32>
    %28 = arith.mulf %27, %17 : vector<4x256xf32>
    %29 = arith.addf %13, %28 : vector<4x256xf32>
    %c3_11 = arith.constant 3 : index
    %c1_12 = arith.constant 1 : index
    %30 = memref.load %arg2[%c3_11, %c1_12] : memref<4x8xf32, #tpu.memory_space<smem>>
    %31 = vector.broadcast %30 : f32 to vector<4x256xf32>
    %32 = arith.mulf %31, %17 : vector<4x256xf32>
    %33 = arith.addf %16, %32 : vector<4x256xf32>
    %34 = vector.extract_strided_slice %3 {offsets = [0, 2], sizes = [4, 256], strides = [1, 1]} : vector<4x384xf32> to vector<4x256xf32>
    %c0_13 = arith.constant 0 : index
    %c2_14 = arith.constant 2 : index
    %35 = memref.load %arg2[%c0_13, %c2_14] : memref<4x8xf32, #tpu.memory_space<smem>>
    %36 = vector.broadcast %35 : f32 to vector<4x256xf32>
    %37 = arith.mulf %36, %34 : vector<4x256xf32>
    %38 = arith.addf %21, %37 : vector<4x256xf32>
    %c1_15 = arith.constant 1 : index
    %c2_16 = arith.constant 2 : index
    %39 = memref.load %arg2[%c1_15, %c2_16] : memref<4x8xf32, #tpu.memory_space<smem>>
    %40 = vector.broadcast %39 : f32 to vector<4x256xf32>
    %41 = arith.mulf %40, %34 : vector<4x256xf32>
    %42 = arith.addf %25, %41 : vector<4x256xf32>
    %c2_17 = arith.constant 2 : index
    %c2_18 = arith.constant 2 : index
    %43 = memref.load %arg2[%c2_17, %c2_18] : memref<4x8xf32, #tpu.memory_space<smem>>
    %44 = vector.broadcast %43 : f32 to vector<4x256xf32>
    %45 = arith.mulf %44, %34 : vector<4x256xf32>
    %46 = arith.addf %29, %45 : vector<4x256xf32>
    %c3_19 = arith.constant 3 : index
    %c2_20 = arith.constant 2 : index
    %47 = memref.load %arg2[%c3_19, %c2_20] : memref<4x8xf32, #tpu.memory_space<smem>>
    %48 = vector.broadcast %47 : f32 to vector<4x256xf32>
    %49 = arith.mulf %48, %34 : vector<4x256xf32>
    %50 = arith.addf %33, %49 : vector<4x256xf32>
    %51 = vector.extract_strided_slice %3 {offsets = [0, 3], sizes = [4, 256], strides = [1, 1]} : vector<4x384xf32> to vector<4x256xf32>
    %c0_21 = arith.constant 0 : index
    %c3_22 = arith.constant 3 : index
    %52 = memref.load %arg2[%c0_21, %c3_22] : memref<4x8xf32, #tpu.memory_space<smem>>
    %53 = vector.broadcast %52 : f32 to vector<4x256xf32>
    %54 = arith.mulf %53, %51 : vector<4x256xf32>
    %55 = arith.addf %38, %54 : vector<4x256xf32>
    %c1_23 = arith.constant 1 : index
    %c3_24 = arith.constant 3 : index
    %56 = memref.load %arg2[%c1_23, %c3_24] : memref<4x8xf32, #tpu.memory_space<smem>>
    %57 = vector.broadcast %56 : f32 to vector<4x256xf32>
    %58 = arith.mulf %57, %51 : vector<4x256xf32>
    %59 = arith.addf %42, %58 : vector<4x256xf32>
    %c2_25 = arith.constant 2 : index
    %c3_26 = arith.constant 3 : index
    %60 = memref.load %arg2[%c2_25, %c3_26] : memref<4x8xf32, #tpu.memory_space<smem>>
    %61 = vector.broadcast %60 : f32 to vector<4x256xf32>
    %62 = arith.mulf %61, %51 : vector<4x256xf32>
    %63 = arith.addf %46, %62 : vector<4x256xf32>
    %c3_27 = arith.constant 3 : index
    %c3_28 = arith.constant 3 : index
    %64 = memref.load %arg2[%c3_27, %c3_28] : memref<4x8xf32, #tpu.memory_space<smem>>
    %65 = vector.broadcast %64 : f32 to vector<4x256xf32>
    %66 = arith.mulf %65, %51 : vector<4x256xf32>
    %67 = arith.addf %50, %66 : vector<4x256xf32>
    %68 = vector.extract_strided_slice %3 {offsets = [0, 4], sizes = [4, 256], strides = [1, 1]} : vector<4x384xf32> to vector<4x256xf32>
    %c0_29 = arith.constant 0 : index
    %c4 = arith.constant 4 : index
    %69 = memref.load %arg2[%c0_29, %c4] : memref<4x8xf32, #tpu.memory_space<smem>>
    %70 = vector.broadcast %69 : f32 to vector<4x256xf32>
    %71 = arith.mulf %70, %68 : vector<4x256xf32>
    %72 = arith.addf %55, %71 : vector<4x256xf32>
    %c1_30 = arith.constant 1 : index
    %c4_31 = arith.constant 4 : index
    %73 = memref.load %arg2[%c1_30, %c4_31] : memref<4x8xf32, #tpu.memory_space<smem>>
    %74 = vector.broadcast %73 : f32 to vector<4x256xf32>
    %75 = arith.mulf %74, %68 : vector<4x256xf32>
    %76 = arith.addf %59, %75 : vector<4x256xf32>
    %c2_32 = arith.constant 2 : index
    %c4_33 = arith.constant 4 : index
    %77 = memref.load %arg2[%c2_32, %c4_33] : memref<4x8xf32, #tpu.memory_space<smem>>
    %78 = vector.broadcast %77 : f32 to vector<4x256xf32>
    %79 = arith.mulf %78, %68 : vector<4x256xf32>
    %80 = arith.addf %63, %79 : vector<4x256xf32>
    %c3_34 = arith.constant 3 : index
    %c4_35 = arith.constant 4 : index
    %81 = memref.load %arg2[%c3_34, %c4_35] : memref<4x8xf32, #tpu.memory_space<smem>>
    %82 = vector.broadcast %81 : f32 to vector<4x256xf32>
    %83 = arith.mulf %82, %68 : vector<4x256xf32>
    %84 = arith.addf %67, %83 : vector<4x256xf32>
    %85 = vector.extract_strided_slice %3 {offsets = [0, 5], sizes = [4, 256], strides = [1, 1]} : vector<4x384xf32> to vector<4x256xf32>
    %c0_36 = arith.constant 0 : index
    %c5 = arith.constant 5 : index
    %86 = memref.load %arg2[%c0_36, %c5] : memref<4x8xf32, #tpu.memory_space<smem>>
    %87 = vector.broadcast %86 : f32 to vector<4x256xf32>
    %88 = arith.mulf %87, %85 : vector<4x256xf32>
    %89 = arith.addf %72, %88 : vector<4x256xf32>
    %c1_37 = arith.constant 1 : index
    %c5_38 = arith.constant 5 : index
    %90 = memref.load %arg2[%c1_37, %c5_38] : memref<4x8xf32, #tpu.memory_space<smem>>
    %91 = vector.broadcast %90 : f32 to vector<4x256xf32>
    %92 = arith.mulf %91, %85 : vector<4x256xf32>
    %93 = arith.addf %76, %92 : vector<4x256xf32>
    %c2_39 = arith.constant 2 : index
    %c5_40 = arith.constant 5 : index
    %94 = memref.load %arg2[%c2_39, %c5_40] : memref<4x8xf32, #tpu.memory_space<smem>>
    %95 = vector.broadcast %94 : f32 to vector<4x256xf32>
    %96 = arith.mulf %95, %85 : vector<4x256xf32>
    %97 = arith.addf %80, %96 : vector<4x256xf32>
    %c3_41 = arith.constant 3 : index
    %c5_42 = arith.constant 5 : index
    %98 = memref.load %arg2[%c3_41, %c5_42] : memref<4x8xf32, #tpu.memory_space<smem>>
    %99 = vector.broadcast %98 : f32 to vector<4x256xf32>
    %100 = arith.mulf %99, %85 : vector<4x256xf32>
    %101 = arith.addf %84, %100 : vector<4x256xf32>
    %102 = vector.extract_strided_slice %3 {offsets = [0, 6], sizes = [4, 256], strides = [1, 1]} : vector<4x384xf32> to vector<4x256xf32>
    %c0_43 = arith.constant 0 : index
    %c6 = arith.constant 6 : index
    %103 = memref.load %arg2[%c0_43, %c6] : memref<4x8xf32, #tpu.memory_space<smem>>
    %104 = vector.broadcast %103 : f32 to vector<4x256xf32>
    %105 = arith.mulf %104, %102 : vector<4x256xf32>
    %106 = arith.addf %89, %105 : vector<4x256xf32>
    %c1_44 = arith.constant 1 : index
    %c6_45 = arith.constant 6 : index
    %107 = memref.load %arg2[%c1_44, %c6_45] : memref<4x8xf32, #tpu.memory_space<smem>>
    %108 = vector.broadcast %107 : f32 to vector<4x256xf32>
    %109 = arith.mulf %108, %102 : vector<4x256xf32>
    %110 = arith.addf %93, %109 : vector<4x256xf32>
    %c2_46 = arith.constant 2 : index
    %c6_47 = arith.constant 6 : index
    %111 = memref.load %arg2[%c2_46, %c6_47] : memref<4x8xf32, #tpu.memory_space<smem>>
    %112 = vector.broadcast %111 : f32 to vector<4x256xf32>
    %113 = arith.mulf %112, %102 : vector<4x256xf32>
    %114 = arith.addf %97, %113 : vector<4x256xf32>
    %c3_48 = arith.constant 3 : index
    %c6_49 = arith.constant 6 : index
    %115 = memref.load %arg2[%c3_48, %c6_49] : memref<4x8xf32, #tpu.memory_space<smem>>
    %116 = vector.broadcast %115 : f32 to vector<4x256xf32>
    %117 = arith.mulf %116, %102 : vector<4x256xf32>
    %118 = arith.addf %101, %117 : vector<4x256xf32>
    %119 = vector.extract_strided_slice %3 {offsets = [0, 7], sizes = [4, 256], strides = [1, 1]} : vector<4x384xf32> to vector<4x256xf32>
    %c0_50 = arith.constant 0 : index
    %c7 = arith.constant 7 : index
    %120 = memref.load %arg2[%c0_50, %c7] : memref<4x8xf32, #tpu.memory_space<smem>>
    %121 = vector.broadcast %120 : f32 to vector<4x256xf32>
    %122 = arith.mulf %121, %119 : vector<4x256xf32>
    %123 = arith.addf %106, %122 : vector<4x256xf32>
    %c1_51 = arith.constant 1 : index
    %c7_52 = arith.constant 7 : index
    %124 = memref.load %arg2[%c1_51, %c7_52] : memref<4x8xf32, #tpu.memory_space<smem>>
    %125 = vector.broadcast %124 : f32 to vector<4x256xf32>
    %126 = arith.mulf %125, %119 : vector<4x256xf32>
    %127 = arith.addf %110, %126 : vector<4x256xf32>
    %c2_53 = arith.constant 2 : index
    %c7_54 = arith.constant 7 : index
    %128 = memref.load %arg2[%c2_53, %c7_54] : memref<4x8xf32, #tpu.memory_space<smem>>
    %129 = vector.broadcast %128 : f32 to vector<4x256xf32>
    %130 = arith.mulf %129, %119 : vector<4x256xf32>
    %131 = arith.addf %114, %130 : vector<4x256xf32>
    %c3_55 = arith.constant 3 : index
    %c7_56 = arith.constant 7 : index
    %132 = memref.load %arg2[%c3_55, %c7_56] : memref<4x8xf32, #tpu.memory_space<smem>>
    %133 = vector.broadcast %132 : f32 to vector<4x256xf32>
    %134 = arith.mulf %133, %119 : vector<4x256xf32>
    %135 = arith.addf %118, %134 : vector<4x256xf32>
    %136 = vector.shape_cast %123 : vector<4x256xf32> to vector<4x1x256xf32>
    %137 = vector.shape_cast %127 : vector<4x256xf32> to vector<4x1x256xf32>
    %138 = vector.shape_cast %131 : vector<4x256xf32> to vector<4x1x256xf32>
    %139 = vector.shape_cast %135 : vector<4x256xf32> to vector<4x1x256xf32>
    %140 = tpu.concatenate %136, %137, %138, %139 in 1 : vector<4x1x256xf32>, vector<4x1x256xf32>, vector<4x1x256xf32>, vector<4x1x256xf32> -> vector<4x4x256xf32>
    %c0_57 = arith.constant 0 : index
    %c0_58 = arith.constant 0 : index
    %c0_59 = arith.constant 0 : index
    %141 = vector.load %arg4[%c0_57, %c0_58, %c0_59] : memref<4x4x256xf32, #tpu.memory_space<vmem>>, vector<4x4x256xf32>
    tpu.vector_store %arg4[%c0_57, %c0_58, %c0_59], %140 {strides = array<i32>} : memref<4x4x256xf32, #tpu.memory_space<vmem>>, vector<4x4x256xf32>,
    return
  }
  func.func @transform_0(%arg0: i32, %arg1: i32) -> (i32, i32) {
    %c0_i32 = arith.constant 0 : i32
    %c0_i32_0 = arith.constant 0 : i32
    %c0_i32_1 = arith.constant 0 : i32
    return %c0_i32, %c0_i32_0 : i32, i32
  }
  func.func @transform_1(%arg0: i32, %arg1: i32) -> (i32, i32) {
    %c0_i32 = arith.constant 0 : i32
    %c0_i32_0 = arith.constant 0 : i32
    return %arg0, %c0_i32 : i32, i32
  }
  func.func @transform_2(%arg0: i32, %arg1: i32) -> (i32, i32, i32) {
    %c0_i32 = arith.constant 0 : i32
    %c0_i32_0 = arith.constant 0 : i32
    return %arg0, %c0_i32, %arg1 : i32, i32, i32
  }
}

</mosaic_0001>

<bundles_post_ra>
// kernel: tpu_custom_call.1
= control target key start
LH: loop header
LB: loop body
LE: loop exit
PB: predicated region body
PF: predicated region fallthrough
CT: control target
= control target key end

     0   :  { %7 = vsyncpa [#allocation5], 0  ;;  %s1232_s0 = inlined_call_operand.hbm [shape: f32[4,8], index: 0, kind: input, shape index: {}]   ;;  %s1233_s1 = inlined_call_operand.hbm [shape: f32[4,384], index: 1, kind: input, shape index: {}]   ;;  %s1234_s2 = inlined_call_operand.hbm [shape: f32[4,4,256], index: 2, kind: output, shape index: {}]  }
   0x1   :  { %8 = vsyncpa [#allocation3], 0 }
   0x2   :  { %9 = vsyncpa [#allocation4], 0  ;;  %s935_s9 = smov [#allocation2]   ;;  %s936_s12 = smov [#allocation6]  }
   0x3   :  { %17 = dma.hbm_to_smem %s1232_s0, 64, %s935_s9, [#allocation5]  }
   0x4   :  { %s24_s13 = sshll.u32 %s936_s12, 4  ;;  %s25_s13 = int_to_ptr.vmem [resolvable:$true] %s24_s13 }
   0x5   :  { %s897_s14 = scalar_lea.vmem %s25_s13, 192  ;;  %p902_p1 = scmp.lt.s32.totalorder %s25_s13, %s25_s13 }
   0x6   :  { %p898_p0 = scmp.ne.s32.totalorder %s25_s13, %s897_s14  ;;  %p903_p2 = scmp.lt.s32.totalorder %s897_s14, %s897_s14 }
   0x8   :  { %p904_p3 = por %p903_p2, %p902_p1 }
   0xa   :  { %p905_p4 = pnand %p904_p3, %p898_p0 }
   0xc   :  { %908 = shalt.err (!%p905_p4)
}
   0xd   :  { %27 = dma.hbm_to_vmem [thread:$0]  %s1233_s1, 192, %s25_s13, [#allocation3]  }
   0xe   :  { %929 = dma.done.wait [#allocation5], 64  }
   0xf   :  { %930 = vsyncadd [#allocation5], 4294967232 }
  0x10   :  { %931 = dma.done.wait [#allocation3], 192  }
  0x11   :  { %932 = vsyncadd [#allocation3], 4294967104 }
  0x12   :  { %34 = sfence }
  0x13   :  { %s841_s0 = sld [smem:[#allocation2 + $0x81]]  ;;  %v969_v0 = vld [vmem:[#allocation6] sm:$0xff]  ;;  %v971_v1 = vld [vmem:[#allocation6 + $0x8] sm:$0xf]  ;;  %s937_s1 = smov 127   ;;  %vm66_vm0 = vcmask 1043456  }
  0x14   :  { %s840_s17 = sld [smem:[#allocation2 + $0x1]]  ;;  %s938_s24 = smov 126   ;;  %vm68_vm1 = vcmask 1039360   ;;  %vm133_vm2 = vcmask 1031168   ;;  %vm198_vm3 = vcmask 1022976   ;;  %vm263_vm4 = vcmask 1014784  }
  0x15   :  { %s842_s18 = sld [smem:[#allocation2 + $0x101]]  ;;  %s939_s29 = smov 125   ;;  %vm328_vm5 = vcmask 1006592   ;;  %vm393_vm6 = vcmask 998400   ;;  %vm458_vm7 = vcmask 990208   ;;  %vm770_vm8 = vcmask 1040384  }
  0x16   :  { %s843_s19 = sld [smem:[#allocation2 + $0x181]]  ;;  %s940_s6 = smov 124   ;;  %vm779_vm9 = vcmask 1041408   ;;  %vm788_vm10 = vcmask 1042432  }
  0x17   :  { %s844_s20 = sld [smem:[#allocation2 + $0x2]]  ;;  %s941_s11 = smov 123  }
  0x18   :  { %s845_s21 = sld [smem:[#allocation2 + $0x82]]  ;;  %s942_s16 = smov 122  }
  0x19   :  { %v73_v2 = vstv %s841_s0  ;;  %s846_s22 = sld [smem:[#allocation2 + $0x102]] }
  0x1a   :  { %v74_v3 = vmul.f32 %v73_v2, %v969_v0  ;;  %v55_v4 = vstv %s840_s17  ;;  %v75_v6 = vmul.f32 %v73_v2, %v971_v1  ;;  %s847_s23 = sld [smem:[#allocation2 + $0x182]] }
  0x1b   :  { %v56_v5 = vmul.f32 %v55_v4, %v969_v0  ;;  %v57_v7 = vmul.f32 %v55_v4, %v971_v1  ;;  %v89_v8 = vstv %s842_s18  ;;  %s848_s25 = sld [smem:[#allocation2 + $0x3]] }
  0x1c   :  { %78 = vrot.lane.b32.xlu1 %v74_v3, %s937_s1  ;;  %v91_v9 = vmul.f32 %v89_v8, %v971_v1  ;;  %v90_v10 = vmul.f32 %v89_v8, %v969_v0  ;;  %v105_v11 = vstv %s843_s19  ;;  %s849_s26 = sld [smem:[#allocation2 + $0x83]] }
  0x1d   :  { %60 = vrot.lane.b32.xlu0 %v56_v5, %s937_s1  ;;  %v107_v12 = vmul.f32 %v105_v11, %v971_v1  ;;  %v106_v13 = vmul.f32 %v105_v11, %v969_v0  ;;  %v121_v14 = vstv %s844_s20  ;;  %s850_s27 = sld [smem:[#allocation2 + $0x103]] }
  0x1e   :  { %v123_v15 = vmul.f32 %v121_v14, %v971_v1  ;;  %v122_v16 = vmul.f32 %v121_v14, %v969_v0  ;;  %v138_v17 = vstv %s845_s21  ;;  %s851_s28 = sld [smem:[#allocation2 + $0x183]] }
  0x1f   :  { %v140_v18 = vmul.f32 %v138_v17, %v971_v1  ;;  %v139_v19 = vmul.f32 %v138_v17, %v969_v0  ;;  %v154_v20 = vstv %s846_s22  ;;  %s852_s30 = sld [smem:[#allocation2 + $0x4]] }
  0x20   :  { %80 = vrot.lane.b32.xlu1 %v75_v6, %s937_s1  ;;  %v156_v21 = vmul.f32 %v154_v20, %v971_v1  ;;  %v155_v22 = vmul.f32 %v154_v20, %v969_v0  ;;  %v170_v23 = vstv %s847_s23  ;;  %s853_s3 = sld [smem:[#allocation2 + $0x84]] }
  0x21   :  { %62 = vrot.lane.b32.xlu0 %v57_v7, %s937_s1  ;;  %v172_v24 = vmul.f32 %v170_v23, %v971_v1  ;;  %v171_v25 = vmul.f32 %v170_v23, %v969_v0  ;;  %v186_v26 = vstv %s848_s25  ;;  %s854_s4 = sld [smem:[#allocation2 + $0x104]] }
  0x22   :  { %v188_v27 = vmul.f32 %v186_v26, %v971_v1  ;;  %v187_v28 = vmul.f32 %v186_v26, %v969_v0  ;;  %v203_v29 = vstv %s849_s26  ;;  %s855_s5 = sld [smem:[#allocation2 + $0x184]] }
  0x23   :  { %v205_v30 = vmul.f32 %v203_v29, %v971_v1  ;;  %v204_v31 = vmul.f32 %v203_v29, %v969_v0  ;;  %v219_v32 = vstv %s850_s27  ;;  %s856_s7 = sld [smem:[#allocation2 + $0x5]] }
  0x24   :  { %96 = vrot.lane.b32.xlu1 %v91_v9, %s937_s1  ;;  %v221_v33 = vmul.f32 %v219_v32, %v971_v1  ;;  %v220_v34 = vmul.f32 %v219_v32, %v969_v0  ;;  %v235_v35 = vstv %s851_s28  ;;  %s857_s8 = sld [smem:[#allocation2 + $0x85]] }
  0x25   :  { %94 = vrot.lane.b32.xlu0 %v90_v10, %s937_s1  ;;  %v237_v36 = vmul.f32 %v235_v35, %v971_v1  ;;  %v236_v37 = vmul.f32 %v235_v35, %v969_v0  ;;  %v251_v38 = vstv %s852_s30  ;;  %s858_s9 = sld [smem:[#allocation2 + $0x105]] }
  0x26   :  { %v253_v39 = vmul.f32 %v251_v38, %v971_v1  ;;  %v252_v40 = vmul.f32 %v251_v38, %v969_v0  ;;  %v268_v41 = vstv %s853_s3  ;;  %s859_s10 = sld [smem:[#allocation2 + $0x185]] }
  0x27   :  { %v270_v42 = vmul.f32 %v268_v41, %v971_v1  ;;  %v269_v43 = vmul.f32 %v268_v41, %v969_v0  ;;  %v284_v44 = vstv %s854_s4  ;;  %s860_s12 = sld [smem:[#allocation2 + $0x6]] }
  0x28   :  { %112 = vrot.lane.b32.xlu1 %v107_v12, %s937_s1  ;;  %v286_v45 = vmul.f32 %v284_v44, %v971_v1  ;;  %v285_v46 = vmul.f32 %v284_v44, %v969_v0  ;;  %v300_v47 = vstv %s855_s5  ;;  %s861_s13 = sld [smem:[#allocation2 + $0x86]] }
  0x29   :  { %110 = vrot.lane.b32.xlu0 %v106_v13, %s937_s1  ;;  %v302_v48 = vmul.f32 %v300_v47, %v971_v1  ;;  %v301_v49 = vmul.f32 %v300_v47, %v969_v0  ;;  %v316_v50 = vstv %s856_s7  ;;  %s862_s14 = sld [smem:[#allocation2 + $0x106]]  ;;  %s943_s1 = smov 121  }
  0x2a   :  { %v318_v51 = vmul.f32 %v316_v50, %v971_v1  ;;  %v317_v52 = vmul.f32 %v316_v50, %v969_v0  ;;  %v333_v53 = vstv %s857_s8  ;;  %s863_s15 = sld [smem:[#allocation2 + $0x186]] }
  0x2b   :  { %v335_v54 = vmul.f32 %v333_v53, %v971_v1  ;;  %v334_v55 = vmul.f32 %v333_v53, %v969_v0  ;;  %v349_v56 = vstv %s858_s9  ;;  %s864_s0 = sld [smem:[#allocation2 + $0x7]] }
  0x2c   :  { %128 = vrot.lane.b32.xlu1 %v123_v15, %s938_s24  ;;  %v351_v57 = vmul.f32 %v349_v56, %v971_v1  ;;  %v350_v58 = vmul.f32 %v349_v56, %v969_v0  ;;  %v365_v59 = vstv %s859_s10  ;;  %s865_s17 = sld [smem:[#allocation2 + $0x87]] }
  0x2d   :  { %126 = vrot.lane.b32.xlu0 %v122_v16, %s938_s24  ;;  %v367_v60 = vmul.f32 %v365_v59, %v971_v1  ;;  %v366_v61 = vmul.f32 %v365_v59, %v969_v0  ;;  %v381_v62 = vstv %s860_s12  ;;  %s866_s18 = sld [smem:[#allocation2 + $0x107]] }
  0x2e   :  { %v383_v63 = vmul.f32 %v381_v62, %v971_v1  ;;  %v382_v2 = vmul.f32 %v381_v62, %v969_v0  ;;  %v398_v3 = vstv %s861_s13  ;;  %s867_s19 = sld [smem:[#allocation2 + $0x187]] }
  0x2f   :  { %v400_v4 = vmul.f32 %v398_v3, %v971_v1  ;;  %v399_v5 = vmul.f32 %v398_v3, %v969_v0  ;;  %v414_v6 = vstv %s862_s14  ;;  %s837_s20 = sld [smem:[#allocation2 + $0x80]] }
  0x30   :  { %145 = vrot.lane.b32.xlu1 %v140_v18, %s938_s24  ;;  %v416_v7 = vmul.f32 %v414_v6, %v971_v1  ;;  %v415_v8 = vmul.f32 %v414_v6, %v969_v0  ;;  %v430_v9 = vstv %s863_s15  ;;  %s42_s21 = sld [smem:[#allocation2]] }
  0x31   :  { %143 = vrot.lane.b32.xlu0 %v139_v19, %s938_s24  ;;  %v432_v10 = vmul.f32 %v430_v9, %v971_v1  ;;  %v431_v11 = vmul.f32 %v430_v9, %v969_v0  ;;  %v446_v12 = vstv %s864_s0  ;;  %s838_s22 = sld [smem:[#allocation2 + $0x100]] }
  0x32   :  { %v448_v13 = vmul.f32 %v446_v12, %v971_v1  ;;  %v447_v14 = vmul.f32 %v446_v12, %v969_v0  ;;  %v463_v15 = vstv %s865_s17  ;;  %s1029_s23 = sld [smem:[#allocation2 + $0x180]] }
  0x33   :  { %v465_v16 = vmul.f32 %v463_v15, %v971_v1  ;;  %v464_v17 = vmul.f32 %v463_v15, %v969_v0  ;;  %v479_v18 = vstv %s866_s18 }
  0x34   :  { %161 = vrot.lane.b32.xlu1 %v156_v21, %s938_s24  ;;  %v481_v19 = vmul.f32 %v479_v18, %v971_v1  ;;  %v480_v20 = vmul.f32 %v479_v18, %v969_v0  ;;  %v495_v21 = vstv %s867_s19 }
  0x35   :  { %159 = vrot.lane.b32.xlu0 %v155_v22, %s938_s24  ;;  %v497_v22 = vmul.f32 %v495_v21, %v971_v1  ;;  %v496_v23 = vmul.f32 %v495_v21, %v969_v0  ;;  %v46_v26 = vstv %s837_s20 }
  0x36   :  { %v47_v1 = vmul.f32 %v46_v26, %v969_v0 }
  0x38   :  { %177 = vrot.lane.b32.xlu1 %v172_v24, %s938_s24  ;;  %v52_v47 = vstv %s1029_s23 }
  0x39   :  { %175 = vrot.lane.b32.xlu0 %v171_v25, %s938_s24  ;;  %s945_s24 = smov [#allocation7]  }
  0x3a   :  { %s822_s25 = sshll.u32 %s945_s24, 4  ;;  %s823_s25 = int_to_ptr.vmem [resolvable:$true] %s822_s25 }
  0x3b   :  { %s909_s26 = scalar_lea.vmem %s823_s25, 512  ;;  %p914_p6 = scmp.lt.s32.totalorder %s823_s25, %s823_s25 }
  0x3c   :  { %193 = vrot.lane.b32.xlu1 %v188_v27, %s939_s29  ;;  %v43_v27 = vstv %s42_s21  ;;  %p910_p5 = scmp.ne.s32.totalorder %s823_s25, %s909_s26  ;;  %p915_p7 = scmp.lt.s32.totalorder %s909_s26, %s909_s26 }
  0x3d   :  { %191 = vrot.lane.b32.xlu0 %v187_v28, %s939_s29 }
  0x3e   :  { %p916_p8 = por %p915_p7, %p914_p6 }
  0x40   :  { %210 = vrot.lane.b32.xlu1 %v205_v30, %s939_s29  ;;  %p917_p9 = pnand %p916_p8, %p910_p5 }
  0x41   :  { %208 = vrot.lane.b32.xlu0 %v204_v31, %s939_s29 }
  0x44   :  { %226 = vrot.lane.b32.xlu1 %v221_v33, %s939_s29 }
  0x45   :  { %224 = vrot.lane.b32.xlu0 %v220_v34, %s939_s29  ;;  %v44_v34 = vmul.f32 %v43_v27, %v969_v0 }
  0x48   :  { %242 = vrot.lane.b32.xlu1 %v237_v36, %s939_s29  ;;  %v49_v36 = vstv %s838_s22 }
  0x49   :  { %240 = vrot.lane.b32.xlu0 %v236_v37, %s939_s29  ;;  %v50_v44 = vmul.f32 %v49_v36, %v969_v0 }
  0x4c   :  { %258 = vrot.lane.b32.xlu1 %v253_v39, %s940_s6 }
  0x4d   :  { %256 = vrot.lane.b32.xlu0 %v252_v40, %s940_s6 }
  0x50   :  { %275 = vrot.lane.b32.xlu1 %v270_v42, %s940_s6 }
  0x51   :  { %273 = vrot.lane.b32.xlu0 %v269_v43, %s940_s6 }
  0x54   :  { %291 = vrot.lane.b32.xlu1 %v286_v45, %s940_s6 }
  0x55   :  { %289 = vrot.lane.b32.xlu0 %v285_v46, %s940_s6 }
  0x58   :  { %307 = vrot.lane.b32.xlu1 %v302_v48, %s940_s6 }
  0x59   :  { %305 = vrot.lane.b32.xlu0 %v301_v49, %s940_s6 }
  0x5c   :  { %323 = vrot.lane.b32.xlu1 %v318_v51, %s941_s11 }
  0x5d   :  { %321 = vrot.lane.b32.xlu0 %v317_v52, %s941_s11 }
  0x60   :  { %340 = vrot.lane.b32.xlu1 %v335_v54, %s941_s11  ;;  %v53_v54 = vmul.f32 %v52_v47, %v969_v0 }
  0x61   :  { %338 = vrot.lane.b32.xlu0 %v334_v55, %s941_s11 }
  0x64   :  { %356 = vrot.lane.b32.xlu1 %v351_v57, %s941_s11 }
  0x65   :  { %354 = vrot.lane.b32.xlu0 %v350_v58, %s941_s11 }
  0x68   :  { %372 = vrot.lane.b32.xlu1 %v367_v60, %s941_s11 }
  0x69   :  { %370 = vrot.lane.b32.xlu0 %v366_v61, %s941_s11 }
  0x6c   :  { %388 = vrot.lane.b32.xlu1 %v383_v63, %s942_s16 }
  0x6d   :  { %386 = vrot.lane.b32.xlu0 %v382_v2, %s942_s16 }
  0x70   :  { %405 = vrot.lane.b32.xlu1 %v400_v4, %s942_s16 }
  0x71   :  { %403 = vrot.lane.b32.xlu0 %v399_v5, %s942_s16 }
  0x74   :  { %421 = vrot.lane.b32.xlu1 %v416_v7, %s942_s16 }
  0x75   :  { %419 = vrot.lane.b32.xlu0 %v415_v8, %s942_s16 }
  0x78   :  { %437 = vrot.lane.b32.xlu1 %v432_v10, %s942_s16 }
  0x79   :  { %435 = vrot.lane.b32.xlu0 %v431_v11, %s942_s16 }
  0x7c   :  { %453 = vrot.lane.b32.xlu1 %v448_v13, %s943_s1 }
  0x7d   :  { %451 = vrot.lane.b32.xlu0 %v447_v14, %s943_s1 }
  0x80   :  { %470 = vrot.lane.b32.xlu1 %v465_v16, %s943_s1 }
  0x81   :  { %468 = vrot.lane.b32.xlu0 %v464_v17, %s943_s1 }
  0x84   :  { %486 = vrot.lane.b32.xlu1 %v481_v19, %s943_s1 }
  0x85   :  { %484 = vrot.lane.b32.xlu0 %v480_v20, %s943_s1 }
  0x88   :  { %502 = vrot.lane.b32.xlu1 %v497_v22, %s943_s1 }
  0x89   :  { %500 = vrot.lane.b32.xlu0 %v496_v23, %s943_s1 }
  0x8e   :  { %v79_v24 = vpop.permute.xlu1 %78 }
  0x8f   :  { %v61_v25 = vpop.permute.xlu0 %60  ;;  %v82_v29 = vrot.slane %v79_v24, 4 }
  0x90   :  { %v64_v32 = vrot.slane %v61_v25, 4 }
  0x92   :  { %v81_v28 = vpop.permute.xlu1 %80 }
  0x93   :  { %v83_v30 = vrot.slane %v81_v28, 4  ;;  %v63_v31 = vpop.permute.xlu0 %62 }
  0x94   :  { %v65_v33 = vrot.slane %v63_v31, 4 }
  0x95   :  { %v84_v35 = vsel %vm66_vm0, %v82_v29, %v83_v30 }
  0x96   :  { %v67_v37 = vsel %vm66_vm0, %v64_v32, %v65_v33  ;;  %v97_v38 = vpop.permute.xlu1 %96  ;;  %v85_v39 = vsel %vm68_vm1, %v79_v24, %v84_v35 }
  0x97   :  { %v99_v40 = vrot.slane %v97_v38, 4  ;;  %v95_v41 = vpop.permute.xlu0 %94  ;;  %v69_v42 = vsel %vm68_vm1, %v61_v25, %v67_v37  ;;  %v87_v43 = vadd.f32 %v85_v39, %v47_v1 }
  0x98   :  { %v98_v45 = vrot.slane %v95_v41, 4  ;;  %v71_v46 = vadd.f32 %v69_v42, %v44_v34 }
  0x9a   :  { %v100_v48 = vsel %vm66_vm0, %v98_v45, %v99_v40  ;;  %v113_v49 = vpop.permute.xlu1 %112 }
  0x9b   :  { %v101_v50 = vsel %vm68_vm1, %v95_v41, %v100_v48  ;;  %v115_v51 = vrot.slane %v113_v49, 4  ;;  %v111_v52 = vpop.permute.xlu0 %110 }
  0x9c   :  { %v103_v53 = vadd.f32 %v101_v50, %v50_v44  ;;  %v114_v55 = vrot.slane %v111_v52, 4 }
  0x9e   :  { %v116_v56 = vsel %vm66_vm0, %v114_v55, %v115_v51  ;;  %v129_v57 = vpop.permute.xlu1 %128 }
  0x9f   :  { %v117_v58 = vsel %vm68_vm1, %v111_v52, %v116_v56  ;;  %v131_v59 = vrot.slane %v129_v57, 4  ;;  %v127_v60 = vpop.permute.xlu0 %126 }
  0xa0   :  { %v119_v61 = vadd.f32 %v117_v58, %v53_v54  ;;  %v130_v62 = vrot.slane %v127_v60, 4 }
  0xa2   :  { %v132_v63 = vsel %vm66_vm0, %v130_v62, %v131_v59  ;;  %v146_v2 = vpop.permute.xlu1 %145 }
  0xa3   :  { %v134_v3 = vsel %vm133_vm2, %v127_v60, %v132_v63  ;;  %v148_v4 = vrot.slane %v146_v2, 4  ;;  %v144_v5 = vpop.permute.xlu0 %143 }
  0xa4   :  { %v136_v6 = vadd.f32 %v134_v3, %v71_v46  ;;  %v147_v0 = vrot.slane %v144_v5, 4 }
  0xa6   :  { %v149_v7 = vsel %vm66_vm0, %v147_v0, %v148_v4  ;;  %v162_v8 = vpop.permute.xlu1 %161  ;;  %v944_v0 = vmov 1966171168  }
  0xa7   :  { %v150_v9 = vsel %vm133_vm2, %v144_v5, %v149_v7  ;;  %v164_v10 = vrot.slane %v162_v8, 4  ;;  %v160_v11 = vpop.permute.xlu0 %159  ;;  %v1086_v7 = vunpack.c.l.s4 %v944_v0 }
  0xa8   :  { %v152_v12 = vadd.f32 %v150_v9, %v87_v43  ;;  %v163_v13 = vrot.slane %v160_v11, 4 }
  0xaa   :  { %v165_v14 = vsel %vm66_vm0, %v163_v13, %v164_v10  ;;  %v178_v15 = vpop.permute.xlu1 %177 }
  0xab   :  { %v166_v16 = vsel %vm133_vm2, %v160_v11, %v165_v14  ;;  %v180_v17 = vrot.slane %v178_v15, 4  ;;  %v176_v18 = vpop.permute.xlu0 %175 }
  0xac   :  { %v1050_v19 = vadd.f32 %v166_v16, %v103_v53  ;;  %v179_v20 = vrot.slane %v176_v18, 4  ;;  %v514_v16 = vlaneseq }
  0xae   :  { %v181_v21 = vsel %vm66_vm0, %v179_v20, %v180_v17  ;;  %v194_v22 = vpop.permute.xlu1 %193 }
  0xaf   :  { %v182_v23 = vsel %vm133_vm2, %v176_v18, %v181_v21  ;;  %v196_v24 = vrot.slane %v194_v22, 4  ;;  %v192_v25 = vpop.permute.xlu0 %191  ;;  %v513_v22 = vunpack.c.0.s8 %v1086_v7 }
  0xb0   :  { %v1054_v26 = vadd.f32 %v182_v23, %v119_v61  ;;  %v195_v27 = vrot.slane %v192_v25, 4 }
  0xb2   :  { %v197_v28 = vsel %vm66_vm0, %v195_v27, %v196_v24  ;;  %v211_v29 = vpop.permute.xlu1 %210 }
  0xb3   :  { %v199_v30 = vsel %vm198_vm3, %v192_v25, %v197_v28  ;;  %v213_v31 = vrot.slane %v211_v29, 4  ;;  %v209_v1 = vpop.permute.xlu0 %208 }
  0xb4   :  { %v1058_v32 = vadd.f32 %v199_v30, %v136_v6  ;;  %v212_v33 = vrot.slane %v209_v1, 4 }
  0xb6   :  { %v214_v34 = vsel %vm66_vm0, %v212_v33, %v213_v31  ;;  %v227_v35 = vpop.permute.xlu1 %226 }
  0xb7   :  { %v215_v36 = vsel %vm198_vm3, %v209_v1, %v214_v34  ;;  %v225_v37 = vpop.permute.xlu0 %224  ;;  %v229_v59 = vrot.slane %v227_v35, 4 }
  0xb8   :  { %v1062_v38 = vadd.f32 %v215_v36, %v152_v12  ;;  %v228_v60 = vrot.slane %v225_v37, 4 }
  0xba   :  { %v243_v39 = vpop.permute.xlu1 %242  ;;  %v230_v8 = vsel %vm66_vm0, %v228_v60, %v229_v59 }
  0xbb   :  { %v1064_v40 = vpop.permute.xlu0 %240  ;;  %v245_v9 = vrot.slane %v243_v39, 4  ;;  %v231_v23 = vsel %vm198_vm3, %v225_v37, %v230_v8 }
  0xbc   :  { %v244_v10 = vrot.slane %v1064_v40, 4 }
  0xbe   :  { %v259_v41 = vpop.permute.xlu1 %258  ;;  %v246_v28 = vsel %vm66_vm0, %v244_v10, %v245_v9 }
  0xbf   :  { %v257_v42 = vpop.permute.xlu0 %256  ;;  %v261_v61 = vrot.slane %v259_v41, 4 }
  0xc0   :  { %v260_v62 = vrot.slane %v257_v42, 4 }
  0xc2   :  { %v276_v43 = vpop.permute.xlu1 %275  ;;  %v262_v11 = vsel %vm66_vm0, %v260_v62, %v261_v61 }
  0xc3   :  { %v274_v44 = vpop.permute.xlu0 %273  ;;  %v278_v63 = vrot.slane %v276_v43, 4  ;;  %v264_v24 = vsel %vm263_vm4, %v257_v42, %v262_v11 }
  0xc4   :  { %v277_v2 = vrot.slane %v274_v44, 4  ;;  %v266_v37 = vadd.f32 %v264_v24, %v1058_v32 }
  0xc6   :  { %v292_v45 = vpop.permute.xlu1 %291  ;;  %v279_v12 = vsel %vm66_vm0, %v277_v2, %v278_v63 }
  0xc7   :  { %v1066_v46 = vpop.permute.xlu0 %289  ;;  %v294_v13 = vrot.slane %v292_v45, 4  ;;  %v280_v29 = vsel %vm263_vm4, %v274_v44, %v279_v12  ;;  %v233_v44 = vadd.f32 %v231_v23, %v1050_v19  ;;  %v247_v45 = vsel %vm198_vm3, %v1064_v40, %v246_v28 }
  0xc8   :  { %v293_v14 = vrot.slane %v1066_v46, 4 }
  0xca   :  { %v1068_v47 = vpop.permute.xlu1 %307  ;;  %v295_v1 = vsel %vm66_vm0, %v293_v14, %v294_v13 }
  0xcb   :  { %v1070_v48 = vpop.permute.xlu0 %305  ;;  %v310_v30 = vrot.slane %v1068_v47, 4 }
  0xcc   :  { %v309_v31 = vrot.slane %v1070_v48, 4 }
  0xce   :  { %v324_v49 = vpop.permute.xlu1 %323  ;;  %v311_v32 = vsel %vm66_vm0, %v309_v31, %v310_v30 }
  0xcf   :  { %v322_v50 = vpop.permute.xlu0 %321  ;;  %v326_v4 = vrot.slane %v324_v49, 4  ;;  %v515_v49 = vshrl.u32 %v514_v16, 7  ;;  %v312_v0 = vsel %vm263_vm4, %v1070_v48, %v311_v32 }
  0xd0   :  { %v325_v5 = vrot.slane %v322_v50, 4 }
  0xd1   :  { %v1135_v7 = vsub.s32 %v513_v22, %v515_v49  ;;  %v1146_v22 = vsub.s32 0, %v515_v49  ;;  %v1148_v23 = vsub.s32 1, %v515_v49 }
  0xd2   :  { %v341_v51 = vpop.permute.xlu1 %340  ;;  %v327_v17 = vsel %vm66_vm0, %v325_v5, %v326_v4  ;;  %v249_v5 = vadd.f32 %v247_v45, %v1054_v26 }
  0xd3   :  { %v1072_v52 = vpop.permute.xlu0 %338  ;;  %v343_v18 = vrot.slane %v341_v51, 4  ;;  %v329_v33 = vsel %vm328_vm5, %v322_v50, %v327_v17  ;;  %v282_v50 = vadd.f32 %v280_v29, %v1062_v38  ;;  %v296_v51 = vsel %vm263_vm4, %v1066_v46, %v295_v1 }
  0xd4   :  { %v342_v20 = vrot.slane %v1072_v52, 4 }
  0xd6   :  { %v1074_v53 = vpop.permute.xlu1 %356  ;;  %v344_v39 = vsel %vm66_vm0, %v342_v20, %v343_v18 }
  0xd7   :  { %v1076_v54 = vpop.permute.xlu0 %354  ;;  %v359_v34 = vrot.slane %v1074_v53, 4  ;;  %v331_v53 = vadd.f32 %v329_v33, %v266_v37 }
  0xd8   :  { %v358_v35 = vrot.slane %v1076_v54, 4 }
  0xda   :  { %v1078_v55 = vpop.permute.xlu1 %372  ;;  %v360_v59 = vsel %vm66_vm0, %v358_v35, %v359_v34 }
  0xdb   :  { %v1080_v56 = vpop.permute.xlu0 %370  ;;  %v375_v19 = vrot.slane %v1078_v55, 4  ;;  %v298_v55 = vadd.f32 %v296_v51, %v233_v44  ;;  %v361_v8 = vsel %vm328_vm5, %v1076_v54, %v360_v59  ;;  %v314_v54 = vadd.f32 %v312_v0, %v249_v5 }
  0xdc   :  { %v374_v40 = vrot.slane %v1080_v56, 4 }
  0xdd   :  { %v363_v20 = vadd.f32 %v361_v8, %v298_v55 }
  0xde   :  { %v389_v57 = vpop.permute.xlu1 %388  ;;  %v376_v12 = vsel %vm66_vm0, %v374_v40, %v375_v19 }
  0xdf   :  { %v1082_v58 = vpop.permute.xlu0 %386  ;;  %v391_v25 = vrot.slane %v389_v57, 4  ;;  %v345_v57 = vsel %vm328_vm5, %v1072_v52, %v344_v39  ;;  %v377_v24 = vsel %vm328_vm5, %v1080_v56, %v376_v12 }
  0xe0   :  { %v390_v27 = vrot.slane %v1082_v58, 4  ;;  %v379_v37 = vadd.f32 %v377_v24, %v314_v54 }
  0xe2   :  { %v406_v3 = vpop.permute.xlu1 %405  ;;  %v392_v47 = vsel %vm66_vm0, %v390_v27, %v391_v25 }
  0xe3   :  { %v1084_v6 = vpop.permute.xlu0 %403  ;;  %v408_v41 = vrot.slane %v406_v3, 4  ;;  %v394_v61 = vsel %vm393_vm6, %v1082_v58, %v392_v47  ;;  %v347_v58 = vadd.f32 %v345_v57, %v282_v50 }
  0xe4   :  { %v407_v42 = vrot.slane %v1084_v6, 4  ;;  %v396_v9 = vadd.f32 %v394_v61, %v331_v53 }
  0xe6   :  { %v1093_v15 = vpop.permute.xlu1 %421  ;;  %v409_v38 = vsel %vm66_vm0, %v407_v42, %v408_v41 }
  0xe7   :  { %v1097_v21 = vpop.permute.xlu0 %419  ;;  %v424_v46 = vrot.slane %v1093_v15, 4  ;;  %v410_v13 = vsel %vm393_vm6, %v1084_v6, %v409_v38 }
  0xe8   :  { %v423_v2 = vrot.slane %v1097_v21, 4  ;;  %v412_v6 = vadd.f32 %v410_v13, %v347_v58 }
  0xea   :  { %v438_v36 = vpop.permute.xlu1 %437  ;;  %v425_v48 = vsel %vm66_vm0, %v423_v2, %v424_v46 }
  0xeb   :  { %v436_v43 = vpop.permute.xlu0 %435  ;;  %v440_v3 = vrot.slane %v438_v36, 4  ;;  %v426_v29 = vsel %vm393_vm6, %v1097_v21, %v425_v48 }
  0xec   :  { %v439_v52 = vrot.slane %v436_v43, 4  ;;  %v428_v39 = vadd.f32 %v426_v29, %v363_v20 }
  0xee   :  { %v454_v60 = vpop.permute.xlu1 %453  ;;  %v441_v16 = vsel %vm66_vm0, %v439_v52, %v440_v3 }
  0xef   :  { %v456_v62 = vrot.slane %v454_v60, 4  ;;  %v452_v63 = vpop.permute.xlu0 %451  ;;  %v442_v30 = vsel %vm393_vm6, %v436_v43, %v441_v16 }
  0xf0   :  { %v455_v4 = vrot.slane %v452_v63, 4  ;;  %v444_v45 = vadd.f32 %v442_v30, %v379_v37 }
  0xf2   :  { %v457_v10 = vsel %vm66_vm0, %v455_v4, %v456_v62  ;;  %v471_v11 = vpop.permute.xlu1 %470 }
  0xf3   :  { %v459_v26 = vsel %vm458_vm7, %v452_v63, %v457_v10  ;;  %v473_v14 = vrot.slane %v471_v11, 4  ;;  %v469_v15 = vpop.permute.xlu0 %468 }
  0xf4   :  { %v461_v17 = vadd.f32 %v459_v26, %v396_v9  ;;  %v472_v18 = vrot.slane %v469_v15, 4 }
  0xf6   :  { %v517_v25 = vrot.slane %v461_v17, %v1135_v7  ;;  %v474_v27 = vsel %vm66_vm0, %v472_v18, %v473_v14  ;;  %v487_v28 = vpop.permute.xlu1 %486 }
  0xf7   :  { %v475_v31 = vsel %vm458_vm7, %v469_v15, %v474_v27  ;;  %v489_v1 = vrot.slane %v487_v28, 4  ;;  %v485_v33 = vpop.permute.xlu0 %484 }
  0xf8   :  { %v518_v34 = vcombine.high %v517_v25, %v517_v25  ;;  %v525_v35 = vrot.slane %v517_v25, %v1135_v7  ;;  %v477_v36 = vadd.f32 %v475_v31, %v412_v6  ;;  %v488_v56 = vrot.slane %v485_v33, 4 }
  0xfa   :  { %v532_v41 = vrot.slane %v518_v34, %v1135_v7  ;;  %v533_v42 = vcombine.high %v525_v35, %v525_v35  ;;  %v503_v44 = vpop.permute.xlu1 %502  ;;  %v613_v21 = vrot.slane %v525_v35, %v1146_v22  ;;  %v542_v43 = vrot.slane %v477_v36, %v1135_v7 }
  0xfb   :  { %v490_v47 = vsel %vm66_vm0, %v488_v56, %v489_v1  ;;  %v501_v49 = vpop.permute.xlu0 %500  ;;  %v617_v51 = vrot.slane %v525_v35, %v1148_v23  ;;  %v505_v53 = vrot.slane %v503_v44, 4 }
  0xfc   :  { %v534_v50 = vcombine.high %v532_v41, %v532_v41  ;;  %v621_v32 = vrot.slane %v532_v41, %v1146_v22  ;;  %v625_v57 = vrot.slane %v532_v41, %v1148_v23  ;;  %v543_v59 = vcombine.high %v542_v43, %v542_v43 }
  0xfd   :  { %v550_v19 = vrot.slane %v542_v43, %v1135_v7  ;;  %v491_v40 = vsel %vm458_vm7, %v485_v33, %v490_v47  ;;  %v629_v60 = vrot.slane %v533_v42, %v1146_v22  ;;  %v633_v61 = vrot.slane %v533_v42, %v1148_v23 }
  0xfe   :  { %v493_v38 = vadd.f32 %v491_v40, %v428_v39  ;;  %v504_v46 = vrot.slane %v501_v49, 4  ;;  %v557_v62 = vrot.slane %v543_v59, %v1135_v7  ;;  %v637_v52 = vrot.slane %v534_v50, %v1146_v22 }
  0xff   :  { %v558_v63 = vcombine.high %v550_v19, %v550_v19  ;;  %v653_v2 = vrot.slane %v550_v19, %v1146_v22  ;;  %v657_v3 = vrot.slane %v550_v19, %v1148_v23  ;;  %v641_v4 = vrot.slane %v534_v50, %v1148_v23 }
 0x100   :  { %v567_v5 = vrot.slane %v493_v38, %v1135_v7  ;;  %v506_v55 = vsel %vm66_vm0, %v504_v46, %v505_v53  ;;  %v559_v0 = vcombine.high %v557_v62, %v557_v62  ;;  %v661_v58 = vrot.slane %v557_v62, %v1146_v22 }
 0x101   :  { %v665_v8 = vrot.slane %v557_v62, %v1148_v23  ;;  %v669_v9 = vrot.slane %v558_v63, %v1146_v22  ;;  %v673_v10 = vrot.slane %v558_v63, %v1148_v23  ;;  %v771_v11 = vsel %vm770_vm8, %v613_v21, %v653_v2 }
 0x102   :  { %v772_v12 = vsel %vm770_vm8, %v617_v51, %v657_v3  ;;  %v568_v13 = vcombine.high %v567_v5, %v567_v5  ;;  %v677_v26 = vrot.slane %v559_v0, %v1146_v22  ;;  %v681_v14 = vrot.slane %v559_v0, %v1148_v23 }
 0x103   :  { %v575_v15 = vrot.slane %v567_v5, %v1135_v7  ;;  %v507_v48 = vsel %vm458_vm7, %v501_v49, %v506_v55  ;;  %v773_v18 = vsel %vm770_vm8, %v621_v32, %v661_v58  ;;  %v774_v54 = vsel %vm770_vm8, %v625_v57, %v665_v8 }
 0x104   :  { %v582_v16 = vrot.slane %v568_v13, %v1135_v7  ;;  %v509_v17 = vadd.f32 %v507_v48, %v444_v45  ;;  %v775_v25 = vsel %vm770_vm8, %v629_v60, %v669_v9  ;;  %v776_v33 = vsel %vm770_vm8, %v633_v61, %v673_v10 }
 0x105   :  { %v583_v20 = vcombine.high %v575_v15, %v575_v15  ;;  %v693_v24 = vrot.slane %v575_v15, %v1146_v22  ;;  %v697_v6 = vrot.slane %v575_v15, %v1148_v23  ;;  %v777_v34 = vsel %vm770_vm8, %v637_v52, %v677_v26 }
 0x106   :  { %v584_v27 = vcombine.high %v582_v16, %v582_v16  ;;  %v701_v28 = vrot.slane %v582_v16, %v1146_v22  ;;  %v705_v29 = vrot.slane %v582_v16, %v1148_v23  ;;  %v592_v30 = vrot.slane %v509_v17, %v1135_v7 }
 0x107   :  { %v709_v31 = vrot.slane %v583_v20, %v1146_v22  ;;  %v713_v1 = vrot.slane %v583_v20, %v1148_v23  ;;  %v778_v39 = vsel %vm770_vm8, %v641_v4, %v681_v14  ;;  %v780_v41 = vsel %vm779_vm9, %v771_v11, %v693_v24 }
 0x108   :  { %v717_v35 = vrot.slane %v584_v27, %v1146_v22  ;;  %v721_v36 = vrot.slane %v584_v27, %v1148_v23  ;;  %v593_v56 = vcombine.high %v592_v30, %v592_v30  ;;  %v600_v37 = vrot.slane %v592_v30, %v1135_v7 }
 0x109   :  { %v781_v42 = vsel %vm779_vm9, %v772_v12, %v697_v6  ;;  %v782_v44 = vsel %vm779_vm9, %v773_v18, %v701_v28  ;;  %v783_v49 = vsel %vm779_vm9, %v774_v54, %v705_v29  ;;  %v784_v50 = vsel %vm779_vm9, %v775_v25, %v709_v31 }
 0x10a   :  { %v607_v45 = vrot.slane %v593_v56, %v1135_v7  ;;  %v608_v21 = vcombine.high %v600_v37, %v600_v37  ;;  %v733_v43 = vrot.slane %v600_v37, %v1146_v22  ;;  %v737_v47 = vrot.slane %v600_v37, %v1148_v23 }
 0x10b   :  { %v785_v51 = vsel %vm779_vm9, %v776_v33, %v713_v1  ;;  %v786_v32 = vsel %vm779_vm9, %v777_v34, %v717_v35  ;;  %v787_v40 = vsel %vm779_vm9, %v778_v39, %v721_v36 }
 0x10c   :  { %v609_v53 = vcombine.high %v607_v45, %v607_v45  ;;  %v741_v57 = vrot.slane %v607_v45, %v1146_v22  ;;  %v745_v59 = vrot.slane %v607_v45, %v1148_v23  ;;  %v749_v7 = vrot.slane %v608_v21, %v1146_v22 }
 0x10d   :  { %v753_v19 = vrot.slane %v608_v21, %v1148_v23  ;;  %v789_v60 = vsel %vm788_vm10, %v780_v41, %v733_v43  ;;  %v790_v61 = vsel %vm788_vm10, %v781_v42, %v737_v47 }
 0x10e   :  { %v757_v38 = vrot.slane %v609_v53, %v1146_v22  ;;  %v761_v46 = vrot.slane %v609_v53, %v1148_v23  ;;  %v791_v62 = vsel %vm788_vm10, %v782_v44, %v741_v57  ;;  %v792_v63 = vsel %vm788_vm10, %v783_v49, %v745_v59 }
 0x10f   :  { %v793_v2 = vsel %vm788_vm10, %v784_v50, %v749_v7  ;;  %v794_v3 = vsel %vm788_vm10, %v785_v51, %v753_v19  ;;  %v805_v52 = vcombine.low %v789_v60, %v790_v61  ;;  %v806_v4 = vcombine.low %v791_v62, %v792_v63 }
 0x110   :  { %v795_v5 = vsel %vm788_vm10, %v786_v32, %v757_v38  ;;  %v796_v55 = vsel %vm788_vm10, %v787_v40, %v761_v46  ;;  %v807_v0 = vcombine.low %v793_v2, %v794_v3 }
 0x111   :  { %v808_v22 = vcombine.low %v795_v5, %v796_v55  ;;  %813 = vst [vmem:[#allocation7] sm:$0xff] %v805_v52  ;;  %814 = vst [vmem:[#allocation7 + $0x8] sm:$0xff] %v806_v4 }
 0x112   :  { %815 = vst [vmem:[#allocation7 + $0x10] sm:$0xff] %v807_v0 }
 0x113   :  { %816 = vst [vmem:[#allocation7 + $0x18] sm:$0xff] %v808_v22 }
 0x114   :  { %920 = shalt.err (!%p917_p9)
}
 0x115   :  { %s946_s27 = smov 128   ;;  %s947_s28 = smov 8  }
 0x116   :  { %828 = dma.vmem_to_hbm [thread:$0]  %s823_s25, 512, %s1234_s2, [#allocation4], %s946_s27, %s946_s27, %s947_s28  }
 0x117   :  { %933 = dma.done.wait [#allocation4], 512  }
 0x118   :  { %934 = vsyncadd [#allocation4], 4294966784 }
 0x119   :  { %832 = vsyncpa [#allocation3], 1 }
 0x11a   :  { %833 = vsyncpa [#allocation4], 1 }
 0x11b   :  { %834 = vsyncpa [#allocation5], 1 }

</bundles_post_ra>
